<compile_context>
chip_gen: v5e
topology: v5e:2x2
jax: 0.10.0
libtpu: 0.0.40
codegen_flags: <defaults>
</compile_context>

<pallas_src>
import functools
import math

import jax
import jax.numpy as jnp
from jax.experimental import pallas as pl
from jax.experimental.pallas import tpu as pltpu


LANE = 128  # TPU lane width; output channels are padded to a multiple of this.


def _round_up(x, m):
    return ((x + m - 1) // m) * m


# ----------------------------------------------------------------------------
# Pallas kernel: fused (phase-blocked, stride-free) Conv1d + bias + ReLU
# ----------------------------------------------------------------------------
def _conv_bias_relu_kernel(x_ref, w_ref, b_ref, o_ref, *, k_b, l_out):
    # x_ref: (L_blk, s*C_in_eff)            phase-blocked input (full sequence)
    # w_ref: (k_b, s*C_in_eff, C_out_pad)   VMEM-resident re-blocked weights
    # b_ref: (1, C_out_pad) f32
    # o_ref: (l_out, C_out_pad)
    #
    # y[j] = sum_q x_blk[j + q] @ W'_q  reproduces the strided convolution.
    acc = jnp.dot(x_ref[pl.ds(0, l_out), :], w_ref[0],
                  preferred_element_type=jnp.float32)
    for q in range(1, k_b):  # static unroll; k_b = ceil(K / stride) is tiny
        acc = acc + jnp.dot(x_ref[pl.ds(q, l_out), :], w_ref[q],
                            preferred_element_type=jnp.float32)
    acc = acc + b_ref[...]
    o_ref[...] = jnp.maximum(acc, 0.0).astype(o_ref.dtype)


def _conv1d_relu_pallas(x_blk, w_blk, b_row, l_out, out_dtype):
    """x_blk: (B, L_blk, s*C_in_eff), w_blk: (k_b, s*C_in_eff, C_out_pad),
    b_row: (1, C_out_pad) f32  ->  (B, l_out, C_out_pad) in out_dtype."""
    B, L_blk, lane_in = x_blk.shape
    k_b, lane_in_w, c_out_pad = w_blk.shape
    assert lane_in_w == lane_in

    kernel = functools.partial(_conv_bias_relu_kernel, k_b=k_b, l_out=l_out)

    x_bytes = L_blk * lane_in * x_blk.dtype.itemsize
    w_bytes = k_b * lane_in * c_out_pad * w_blk.dtype.itemsize
    b_bytes = c_out_pad * 4
    o_bytes = l_out * c_out_pad * jnp.dtype(out_dtype).itemsize
    acc_bytes = l_out * c_out_pad * 4

    bytes_accessed = (B * x_bytes + w_bytes + b_bytes + B * o_bytes)
    cost = pl.CostEstimate(
        flops=2 * B * l_out * lane_in * c_out_pad * k_b,
        transcendentals=0,
        bytes_accessed=bytes_accessed,
    )

    # Double-buffered inputs/outputs + f32 accumulator + 25% headroom.
    vmem_need = int(1.25 * (2 * (x_bytes + w_bytes + b_bytes + o_bytes) + acc_bytes))
    vmem_limit = min(128 << 20, max(32 << 20, vmem_need))

    return pl.pallas_call(
        kernel,
        out_shape=jax.ShapeDtypeStruct((B, l_out, c_out_pad), out_dtype),
        grid_spec=pltpu.PrefetchScalarGridSpec(
            num_scalar_prefetch=0,
            grid=(B,),  # one full sequence (all output rows) per grid step
            in_specs=[
                pl.BlockSpec((None, L_blk, lane_in), lambda b: (b, 0, 0)),
                pl.BlockSpec((k_b, lane_in, c_out_pad), lambda b: (0, 0, 0)),
                pl.BlockSpec((1, c_out_pad), lambda b: (0, 0)),
            ],
            out_specs=pl.BlockSpec((None, l_out, c_out_pad), lambda b: (b, 0, 0)),
        ),
        compiler_params=pltpu.CompilerParams(
            dimension_semantics=("parallel",),  # batches shard across TCs (megacore)
            vmem_limit_bytes=vmem_limit,
        ),
        cost_estimate=cost,
    )(x_blk, w_blk, b_row)


# ----------------------------------------------------------------------------
# Weight re-blocking: fold the conv stride into the channel (lane) dimension.
# ----------------------------------------------------------------------------
def _block_weight(w, stride, c_in_eff, c_out_pad, dtype):
    """(C_out, C_in, K) Conv1d weight -> (ceil(K/s), s*c_in_eff, c_out_pad).

    Tap q, row r*c_in_eff + c holds w[:, c, q*s + r] (zero where out of range),
    matching the phase-blocked input layout x_blk[m, r*c_in_eff + c] = x[m*s+r, c],
    so   y[j] = sum_q x_blk[j+q] @ W'_q   reproduces the strided convolution.
    """
    c_out, c_in, k = w.shape
    k_b = -(-k // stride)  # ceil(K / s)
    w = jnp.pad(w, ((0, c_out_pad - c_out),
                    (0, c_in_eff - c_in),
                    (0, k_b * stride - k)))
    w = w.reshape(c_out_pad, c_in_eff, k_b, stride)
    w = jnp.transpose(w, (2, 3, 1, 0))  # (k_b, stride, c_in_eff, c_out_pad)
    return w.reshape(k_b, stride * c_in_eff, c_out_pad).astype(dtype)


# ----------------------------------------------------------------------------
# Encoder: deterministic parameter init + forward pass
# ----------------------------------------------------------------------------
def init_encoder_params(key, input_dim, hidden_dim, strides, filter_sizes, paddings):
    assert len(strides) == len(filter_sizes) == len(paddings), (
        "Inconsistent length of strides, filter sizes and padding"
    )
    params = []
    c_in = input_dim
    for fs in filter_sizes:
        key, kw, kb = jax.random.split(key, 3)
        # Match PyTorch Conv1d default init: U(-sqrt(k), sqrt(k)), k = 1/(C_in*K)
        bound = 1.0 / math.sqrt(c_in * fs)
        w = jax.random.uniform(
            kw, (hidden_dim, c_in, fs), jnp.float32, minval=-bound, maxval=bound
        )
        b = jax.random.uniform(
            kb, (hidden_dim,), jnp.float32, minval=-bound, maxval=bound
        )
        params.append((w, b))
        c_in = hidden_dim
    return params


def encoder_forward(x_ncl, params, strides, filter_sizes, paddings,
                    *, compute_dtype=jnp.bfloat16):
    """x_ncl: (B, C_in, L) float32 -> (B, hidden_dim, L_final) float32."""
    x = jnp.transpose(x_ncl, (0, 2, 1))  # NCL -> NLC
    n_layers = len(params)
    for i, ((w, b), s, k, p) in enumerate(zip(params, strides, filter_sizes, paddings)):
        B, L, c_eff = x.shape            # c_eff is the (possibly lane-padded) channel count
        c_out = w.shape[0]
        c_out_pad = _round_up(c_out, LANE)
        l_out = (L + 2 * p - k) // s + 1
        assert l_out >= 1, "sequence too short for this conv layer"

        # Zero-pad the length (conv padding + tail so it divides the stride), then
        # do the *contiguous* reshape (B, L_pad, C) -> (B, L_pad//s, s*C): this
        # turns the strided conv into a stride-1 conv with ceil(K/s) taps.
        l_padded = L + 2 * p
        l_pad2 = _round_up(l_padded, s)
        x_pad = jnp.pad(x, ((0, 0), (p, p + (l_pad2 - l_padded)), (0, 0)))
        x_blk = x_pad.reshape(B, l_pad2 // s, s * c_eff).astype(compute_dtype)

        w_blk = _block_weight(w, s, c_eff, c_out_pad, compute_dtype)
        b_row = jnp.pad(b, (0, c_out_pad - c_out)).reshape(1, c_out_pad).astype(jnp.float32)

        # Intermediate activations stay bf16 and lane-padded (padded channels are
        # exactly zero through bias+ReLU); the final layer is emitted in f32.
        out_dtype = jnp.float32 if i == n_layers - 1 else compute_dtype
        x = _conv1d_relu_pallas(x_blk, w_blk, b_row, l_out, out_dtype)

    hidden_dim = params[-1][0].shape[0]
    x = x[..., :hidden_dim]              # drop lane padding once, at the very end
    return jnp.transpose(x, (0, 2, 1))   # NLC -> NCL


# ----------------------------------------------------------------------------
# Pure-JAX reference (sanity check of the Pallas path)
# ----------------------------------------------------------------------------
def encoder_forward_ref(x_ncl, params, strides, filter_sizes, paddings):
    x = x_ncl
    for (w, b), s, fs, p in zip(params, strides, filter_sizes, paddings):
        y = jax.lax.conv_general_dilated(
            x, w, window_strides=(s,), padding=[(p, p)],
            dimension_numbers=("NCH", "OIH", "NCH"),
        )
        y = y + b.reshape(1, -1, 1)
        x = jnp.maximum(y, 0.0)
    return x


if __name__ == "__main__":
    # Small, module-consistent shapes: Conv1d stack on (B, C, L).
    B, C_in, L = 2, 4, 16
    hidden_dim = 32
    strides = [2, 2]
    filter_sizes = [3, 3]
    paddings = [1, 1]

    key = jax.random.PRNGKey(0)
    key, kx = jax.random.split(key)
    x = jax.random.normal(kx, (B, C_in, L), jnp.float32)

    params = init_encoder_params(key, C_in, hidden_dim, strides, filter_sizes, paddings)

    fwd = functools.partial(
        encoder_forward,
        params=params,
        strides=strides,
        filter_sizes=filter_sizes,
        paddings=paddings,
    )
    out = jax.block_until_ready(fwd(x))

    # Sanity check against a pure-JAX f32 conv reference.  The Pallas path uses
    # bf16 MXU operands + bf16 inter-layer activations (f32 accumulation), so
    # allow ~1% of the O(1) activation scale.
    ref = jax.block_until_ready(
        encoder_forward_ref(x, params, strides, filter_sizes, paddings)
    )
    assert out.shape == ref.shape, (out.shape, ref.shape)
    err = float(jnp.max(jnp.abs(out - ref)))
    assert err < 5e-2, err

    print("KERNEL_OK")
</pallas_src>

<mosaic_0001>
module attributes {stable_mosaic.version = 11 : i64} {
  func.func @_conv_bias_relu_kernel(%arg0: i32, %arg1: memref<1x9x8xbf16, #tpu.memory_space<vmem>>, %arg2: memref<2x8x128xbf16, #tpu.memory_space<vmem>>, %arg3: memref<1x128xf32, #tpu.memory_space<vmem>>, %arg4: memref<1x8x128xbf16, #tpu.memory_space<vmem>>) attributes {dimension_semantics = [#tpu.dimension_semantics<parallel>], iteration_bounds = array<i64: 2>, scalar_prefetch = 0 : i64, scratch_operands = 0 : i64, tpu.core_type = #tpu.core_type<tc>, window_params = [{transform_indices = @transform_0, window_bounds = array<i64: 1, 9, 8>}, {pipeline_mode = #tpu.pipeline_mode<synchronous>, transform_indices = @transform_1, window_bounds = array<i64: 2, 8, 128>}, {pipeline_mode = #tpu.pipeline_mode<synchronous>, transform_indices = @transform_2, window_bounds = array<i64: 1, 128>}, {transform_indices = @transform_3, window_bounds = array<i64: 1, 8, 128>}]} {
    %c0 = arith.constant 0 : index
    %c0_0 = arith.constant 0 : index
    %c0_1 = arith.constant 0 : index
    %0 = vector.load %arg1[%c0, %c0_0, %c0_1] : memref<1x9x8xbf16, #tpu.memory_space<vmem>>, vector<1x8x8xbf16>
    %1 = vector.shape_cast %0 : vector<1x8x8xbf16> to vector<8x8xbf16>
    %c0_2 = arith.constant 0 : index
    %c0_3 = arith.constant 0 : index
    %c0_4 = arith.constant 0 : index
    %2 = vector.load %arg2[%c0_2, %c0_3, %c0_4] : memref<2x8x128xbf16, #tpu.memory_space<vmem>>, vector<1x8x128xbf16>
    %3 = vector.shape_cast %2 : vector<1x8x128xbf16> to vector<8x128xbf16>
    %cst = arith.constant dense<0.000000e+00> : vector<8x128xf32>
    %4 = tpu.matmul %1, %3, %cst {dimension_numbers = #tpu.dot_dimension_numbers<[1], [0], [0], [1], [0, 0, 1, 1], [], []>} : vector<8x8xbf16>, vector<8x128xbf16>, vector<8x128xf32> -> vector<8x128xf32>
    %c0_5 = arith.constant 0 : index
    %c1 = arith.constant 1 : index
    %c0_6 = arith.constant 0 : index
    %5 = vector.load %arg1[%c0_5, %c1, %c0_6] : memref<1x9x8xbf16, #tpu.memory_space<vmem>>, vector<1x8x8xbf16>
    %6 = vector.shape_cast %5 : vector<1x8x8xbf16> to vector<8x8xbf16>
    %c1_7 = arith.constant 1 : index
    %c0_8 = arith.constant 0 : index
    %c0_9 = arith.constant 0 : index
    %7 = vector.load %arg2[%c1_7, %c0_8, %c0_9] : memref<2x8x128xbf16, #tpu.memory_space<vmem>>, vector<1x8x128xbf16>
    %8 = vector.shape_cast %7 : vector<1x8x128xbf16> to vector<8x128xbf16>
    %cst_10 = arith.constant dense<0.000000e+00> : vector<8x128xf32>
    %9 = tpu.matmul %6, %8, %cst_10 {dimension_numbers = #tpu.dot_dimension_numbers<[1], [0], [0], [1], [0, 0, 1, 1], [], []>} : vector<8x8xbf16>, vector<8x128xbf16>, vector<8x128xf32> -> vector<8x128xf32>
    %10 = arith.addf %4, %9 : vector<8x128xf32>
    %c0_11 = arith.constant 0 : index
    %c0_12 = arith.constant 0 : index
    %11 = vector.load %arg3[%c0_11, %c0_12] : memref<1x128xf32, #tpu.memory_space<vmem>>, vector<1x128xf32>
    %12 = vector.broadcast %11 : vector<1x128xf32> to vector<8x128xf32>
    %13 = arith.addf %10, %12 : vector<8x128xf32>
    %cst_13 = arith.constant 0.000000e+00 : f32
    %14 = vector.broadcast %cst_13 : f32 to vector<8x128xf32>
    %15 = arith.maximumf %13, %14 : vector<8x128xf32>
    %16 = arith.truncf %15 : vector<8x128xf32> to vector<8x128xbf16>
    %c0_14 = arith.constant 0 : index
    %c0_15 = arith.constant 0 : index
    %c0_16 = arith.constant 0 : index
    %17 = vector.load %arg4[%c0_14, %c0_15, %c0_16] : memref<1x8x128xbf16, #tpu.memory_space<vmem>>, vector<1x8x128xbf16>
    %18 = vector.shape_cast %17 : vector<1x8x128xbf16> to vector<8x128xbf16>
    %19 = vector.shape_cast %16 : vector<8x128xbf16> to vector<1x8x128xbf16>
    tpu.vector_store %arg4[%c0_14, %c0_15, %c0_16], %19 {strides = array<i32>} : memref<1x8x128xbf16, #tpu.memory_space<vmem>>, vector<1x8x128xbf16>,
    return
  }
  func.func @transform_0(%arg0: i32) -> (i32, i32, i32) {
    %c0_i32 = arith.constant 0 : i32
    %c0_i32_0 = arith.constant 0 : i32
    %c0_i32_1 = arith.constant 0 : i32
    return %arg0, %c0_i32, %c0_i32_0 : i32, i32, i32
  }
  func.func @transform_1(%arg0: i32) -> (i32, i32, i32) {
    %c0_i32 = arith.constant 0 : i32
    %c0_i32_0 = arith.constant 0 : i32
    %c0_i32_1 = arith.constant 0 : i32
    %c0_i32_2 = arith.constant 0 : i32
    return %c0_i32, %c0_i32_0, %c0_i32_1 : i32, i32, i32
  }
  func.func @transform_2(%arg0: i32) -> (i32, i32) {
    %c0_i32 = arith.constant 0 : i32
    %c0_i32_0 = arith.constant 0 : i32
    %c0_i32_1 = arith.constant 0 : i32
    return %c0_i32, %c0_i32_0 : i32, i32
  }
  func.func @transform_3(%arg0: i32) -> (i32, i32, i32) {
    %c0_i32 = arith.constant 0 : i32
    %c0_i32_0 = arith.constant 0 : i32
    %c0_i32_1 = arith.constant 0 : i32
    return %arg0, %c0_i32, %c0_i32_0 : i32, i32, i32
  }
}

</mosaic_0001>

<bundles_post_ra>
// kernel: tpu_custom_call.1
= control target key start
LH: loop header
LB: loop body
LE: loop exit
PB: predicated region body
PF: predicated region fallthrough
CT: control target
= control target key end

     0   :  { %8 = vsyncpa [#allocation3], 0  ;;  %s548_s0 = inlined_call_operand.vmem [shape: bf16[2,9,8], index: 0, kind: input, shape index: {}]   ;;  %s549_s1 = inlined_call_operand.vmem [shape: bf16[2,8,128], index: 1, kind: input, shape index: {}]   ;;  %s550_s2 = inlined_call_operand.vmem [shape: f32[1,128], index: 2, kind: input, shape index: {}]   ;;  %s551_s3 = inlined_call_operand.hbm [shape: bf16[2,8,128], index: 3, kind: output, shape index: {}]  }
   0x1   :  { %10 = vsyncpa [#allocation3 + $0x1], 0  ;;  %s454_s12 = smov 0   ;;  %s456_s13 = smov 0  }
   0x2   :  { %s458_s14 = smov 0   ;;  %s460_s15 = smov 0  }
   0x3 LB: > { %s475_s16 = sadd.s32 4294967295, %s432_s15   ;;  %s310_s17 = sadd.s32 4294967294, %s432_s15   ;;  %s432_s15 = sphi %s460_s15, %s557_s15   ;;  %s428_s14 = sphi %s458_s14, %s556_s14   ;;  %s424_s13 = sphi %s456_s13, %s555_s13   ;;  %s420_s12 = sphi %s454_s12, %s554_s12  }
   0x4   : > { %s479_s18 = sadd.s32 1, %s432_s15   ;;  %s91_s19 = sadd.s32 1, %s428_s14 }
   0x5   : > { %s88_s20 = ssub.s32 %s432_s15, %s479_s18  ;;  %p101_p0 = scmp.ne.s32.totalorder %s428_s14, %s424_s13 }
   0x6   : > { %p89_p1 = scmp.eq.s32.totalorder %s88_s20, 0  ;;  %p102_p2 = scmp.eq.s32.totalorder %s475_s16, 1 }
   0x7   : > { %p107_p3 = scmp.ne.s32.totalorder %s424_s13, %s420_s12  ;;  %p108_p4 = scmp.eq.s32.totalorder %s310_s17, 1 }
   0x8   : > { %s490_s21 = scalar_select %p89_p1, %s428_s14, %s91_s19  }
   0x9   : > { %p492_p5 = por %p102_p2, %p101_p0  ;;  %p496_p6 = por %p108_p4, %p107_p3 }
   0xa   : > { %p313_p7 = scmp.ge.s32.totalorder %s432_s15, 1  ;;  %p140_p8 = scmp.lt.s32.totalorder %s432_s15, 3 }
   0xc   : > { %p141_p9 = pnand %p313_p7, %p140_p8 }
   0xd   : > { %p164_p10 = scmp.lt.s32.totalorder (!%p141_p9), %s475_s16, 1  ;;  %s161_s6 = sand.u32 (!%p141_p9), 1, %s424_s13  }
   0xe   : > { %144 = sbr.rel (%p141_p9) target bundleno = 170 (0xaa), region = 32  ;;  %s314_s7 = sshll.u32 (!%p141_p9), %s161_s6, 2 }
   0xf   : > { %s325_s8 = sshll.u32 (!%p141_p9), %s475_s16, 2  ;;  %s163_s20 = scalar_lea.vmem (!%p141_p9), [#allocation2], %s314_s7 }
  0x10   : > { %s246_s19 = scalar_lea.hbm (!%p141_p9), %s551_s3, %s325_s8  ;;  %s248_s24 = sshll.u32 (!%p141_p9), %s163_s20, 4  ;;  %s249_s24 = int_to_ptr.vmem [resolvable:$true] %s248_s24 }
  0x11   : > { %s250_s25 = sshll.u32 (!%p141_p9), %s246_s19, 4  ;;  %s390_s30 = scalar_lea.hbm (!%p141_p9), %s551_s3, 8  ;;  %s251_s25 = int_to_ptr.hbm [resolvable:$true] %s250_s25 }
  0x12   : > { %s384_s26 = sshra.s32 (!%p141_p9), %s251_s25, 4  ;;  %s385_s26 = int_to_ptr.hbm [resolvable:$true] %s384_s26 }
  0x13   : > { %v171_v0 = vld [vmem:[%s549_s1] sm:$0xf]  ;;  %vm191_vm0 = vcmask 1043456   ;;  %v317_v2 = vld [vmem:[%s549_s1 + $0x4] sm:$0xf]  ;;  %s165_s28 = scalar_select %p164_p10, %s475_s16, 1 }
  0x14   : > { %v212_v1 = vsel %vm191_vm0, %v171_v0, 0  ;;  %v193_v3 = vsel %vm191_vm0, %v317_v2, 0  ;;  %vm187_vm1 = vcmask 64512   ;;  %v369_v13 = vld [vmem:[%s550_s2] ss:$0 sm:$0xff]  ;;  %s236_s16 = scalar_lea.sflag [#allocation3], %s161_s6  ;;  %p391_p0 = scmp.lt.s32.totalorder %s385_s26, %s551_s3 }
  0x15   : > { %221 = vmatpush.bf16.msra.mxu1 %v212_v1  ;;  %202 = vmatpush.bf16.msra.mxu0 %v193_v3  ;;  %s328_s29 = sshll.u32 %s165_s28, 3  ;;  %s386_s27 = scalar_lea.hbm %s385_s26, 4 }
  0x16   : > { %s168_s5 = scalar_lea.vmem %s548_s0, %s328_s29  ;;  %p387_p11 = scmp.ne.s32.totalorder %s385_s26, %s386_s27 }
  0x17   : > { %v170_v4 = vld [vmem:[%s168_s5] sm:$0xf]  ;;  %v329_v6 = vld [vmem:[%s168_s5] sm:$0x10]  ;;  %p392_p1 = scmp.lt.s32.totalorder %s390_s30, %s386_s27 }
  0x18   : > { %v320_v5 = vld [vmem:[%s168_s5] sm:$0xf]  ;;  %323 = vmatmul.msk.bf16.vlgmr.msra.gmra.mxu1 %vm187_vm1, %v170_v4  ;;  %p388_p12 = pnand %p387_p11, %p492_p5 }
  0x19   : > { %v321_v7 = vor.u32 %v329_v6, %v320_v5  ;;  %p393_p2 = por %p392_p1, %p391_p0 }
  0x1a   : > { %p389_p13 = pneg %p388_p12 }
  0x1b   : > { %v181_v8 = vshrl.u32 %v321_v7, 16  ;;  %v183_v9 = vshll.u32 %v321_v7, 16 }
  0x1c   : > { %p394_p3 = pnand %p393_p2, %p389_p13 }
  0x1d   : > { %v185_v10 = vrot.slane %v183_v9, 1 }
  0x1f   : > { %v186_v11 = vor.u32 %v185_v10, %v181_v8 }
  0x21   : > { %322 = vmatmul.msk.bf16.vlgmr.msra.gmra.mxu0 %vm187_vm1, %v186_v11 }
  0x95   : > { %v223_v12 = vpop.f32.mrf.mxu1 }
  0x9d   : > { %v225_v15 = vpop.f32.mrf.mxu1 }
  0x9e   : > { %v204_v14 = vpop.f32.mrf.mxu0 }
  0x9f   : > { %v224_v16 = vadd.f32 %v223_v12, %v204_v14 }
  0xa1   : > { %v231_v17 = vadd.f32 %v369_v13, %v224_v16 }
  0xa3   : > { %v232_v18 = vmax.f32 %v231_v17, 0.0 }
  0xa5   : > { %v233_v19 = vpack.c.bf16 %v232_v18, %v232_v18 }
  0xa6   : > { %v206_v20 = vpop.f32.mrf.mxu0 }
  0xa7   : > { %234 = vst [vmem:[%s163_s20] sm:$0xf] %v233_v19 }
  0xa8   : > { %397 = shalt.err (!%p394_p3)
}
  0xa9   : > { %330 = dma.vmem_to_hbm [thread:$0]  (%p492_p5), %s249_s24, 64, %s251_s25, %s236_s16  }
  0xaa PF: > { %p336_p4 = scmp.ge.s32.totalorder %s432_s15, 2  ;;  %s262_s6 = sand.u32 1, %s420_s12  }
  0xab   : > { %s263_s7 = scalar_lea.sflag [#allocation3], %s262_s6 }
  0xac   : > { %p333_p7 = pnand %p336_p4, %p496_p6 }
  0xae   : > { %p334_p8 = pneg %p333_p7 }
  0xb0   : > { %415 = dma.done.wait (%p334_p8), %s263_s7, 64  }
  0xb1   : > { %417 = vsyncadd (%p334_p8), %s263_s7, 4294967232  ;;  %p13_p9 = scmp.ge.s32.totalorder %s479_s18, 4   ;;  %s554_s12 = smov %s424_s13 }
  0xb2   : > { %s555_s13 = smov %s428_s14  ;;  %s556_s14 = smov %s490_s21 }
  0xb3   : > { %s557_s15 = smov %s479_s18  ;;  %15 = sbr.rel (!%p13_p9) target bundleno = 3 (0x3), region = 68 }
  0xb8   :  { %269 = vsyncpa [#allocation3], 1 }
  0xb9   :  { %271 = vsyncpa [#allocation3 + $0x1], 1 }

</bundles_post_ra>
